<compile_context>
chip_gen: v7x
topology: tpu7x:2x2x1
jax: 0.10.0
libtpu: 0.0.40
codegen_flags: <defaults>
</compile_context>

<pallas_src>
import jax
import jax.numpy as jnp
from jax import lax
from jax.experimental import pallas as pl
from jax.experimental.pallas import tpu as pltpu

NUM_CYCLE_POWERS = 10   # fixed `for j in range(10)` in the reference
CYCLE_PAD = 16          # diagonals written as one aligned (tm, 16) slab


def _vmem_limit_bytes():
    """Generation-aware scoped-VMEM limit: ~100 MiB on v5e/v6e (128 MiB physical),
    ~51 MiB on v7x (64 MiB physical); conservative fallback if the query fails."""
    cap = 64 * 1024 * 1024
    try:
        info = pltpu.get_tpu_info()
        c = int(getattr(info, "vmem_capacity_bytes", 0) or 0)
        if c > 0:
            cap = c
    except Exception:
        pass
    return max(32 * 1024 * 1024, min(100 * 1024 * 1024, int(cap * 0.8)))


_VMEM_LIMIT = _vmem_limit_bytes()
_BIG_VMEM = _VMEM_LIMIT >= 96 * 1024 * 1024
_ROW_TILES = (1024, 512, 256, 128) if _BIG_VMEM else (512, 256, 128)
_COL_TILES = (2048, 1024, 512, 256, 128) if _BIG_VMEM else (1024, 512, 256, 128)
_CYC_TILES = (512, 256, 128)


def _pick_tile(dim, candidates):
    """Largest candidate tile dividing `dim`; fall back to the full dim (always a
    legal block shape) for small / non-dividing sizes."""
    for c in candidates:
        if dim % c == 0:
            return c
    return dim


# ---------------------------------------------------------------------------
# Kernel 1: cycle counts -- diag(A^1) .. diag(A^10), row-tiled, bf16 MXU chain.
# A (bf16, exact for 0/1) is resident per repetition; the power chain T_j is
# carried only for this block's rows. Diagonal is taken BEFORE the next matmul
# and the final (unused) power is never computed, matching the reference loop.
# ---------------------------------------------------------------------------
def _cycle_kernel(a_ref, cyc_ref):
    n = a_ref.shape[2]
    tm = cyc_ref.shape[1]
    row0 = pl.multiple_of(pl.program_id(1) * tm, tm)

    a_bf = a_ref[0]                                              # (n, n) bf16, resident
    t = a_ref[0, pl.ds(row0, tm), :].astype(jnp.float32)         # rows of A^1, f32

    row = lax.broadcasted_iota(jnp.int32, (tm, n), 0)
    col = lax.broadcasted_iota(jnp.int32, (tm, n), 1)
    diag_mask = col == (row + row0)                              # global diagonal picker
    colp = lax.broadcasted_iota(jnp.int32, (tm, CYCLE_PAD), 1)

    out = jnp.zeros((tm, CYCLE_PAD), jnp.float32)
    for j in range(NUM_CYCLE_POWERS):                            # static unroll
        d = jnp.sum(jnp.where(diag_mask, t, 0.0), axis=1, keepdims=True)   # (tm, 1)
        out = out + jnp.where(colp == j, d, 0.0)
        if j < NUM_CYCLE_POWERS - 1:                             # unused A^11 skipped
            t = jnp.dot(t.astype(jnp.bfloat16), a_bf,
                        preferred_element_type=jnp.float32)
    cyc_ref[0] = out                                             # one aligned bulk store


def cycle_counts(adjs, *, tile_m=None):
    """adjs: [rep, N, N] f32 (0/1) -> [rep, N, CYCLE_PAD]; [..., :10] = diag(A^1..A^10)."""
    rep, n, _ = adjs.shape
    tm = tile_m or _pick_tile(n, _CYC_TILES)
    assert n % tm == 0, "cycle row tile must divide N"
    a_bf = adjs.astype(jnp.bfloat16)        # exact for 0/1 entries; halves the HBM stream
    return pl.pallas_call(
        _cycle_kernel,
        out_shape=jax.ShapeDtypeStruct((rep, n, CYCLE_PAD), jnp.float32),
        grid=(rep, n // tm),
        in_specs=[pl.BlockSpec((1, n, n), lambda r, i: (r, 0, 0))],   # A resident per rep
        out_specs=pl.BlockSpec((1, tm, CYCLE_PAD), lambda r, i: (r, i, 0)),
        compiler_params=pltpu.CompilerParams(
            dimension_semantics=("parallel", "parallel"),
            vmem_limit_bytes=_VMEM_LIMIT),
    )(a_bf)


# ---------------------------------------------------------------------------
# Kernel 2a: plain dense matmul, row-tiled (used for HW = H @ [W_r]_cat).
# ---------------------------------------------------------------------------
def _matmul_kernel(x_ref, w_ref, o_ref):
    o_ref[...] = jnp.dot(x_ref[...], w_ref[...], preferred_element_type=jnp.float32)


def dense_matmul(x, w, *, tile_m=None):
    m, k = x.shape
    nn = w.shape[1]
    tm = tile_m or _pick_tile(m, _ROW_TILES)
    assert m % tm == 0, "matmul row tile must divide M"
    return pl.pallas_call(
        _matmul_kernel,
        out_shape=jax.ShapeDtypeStruct((m, nn), jnp.float32),
        grid=(m // tm,),
        in_specs=[pl.BlockSpec((tm, k), lambda i: (i, 0)),
                  pl.BlockSpec((k, nn), lambda i: (0, 0))],
        out_specs=pl.BlockSpec((tm, nn), lambda i: (i, 0)),
        compiler_params=pltpu.CompilerParams(
            dimension_semantics=("parallel",),
            vmem_limit_bytes=_VMEM_LIMIT),
    )(x, w)


# ---------------------------------------------------------------------------
# Kernel 2b: RGCN relation accumulation over a bit-packed adjacency.
#   grid = (N/tm ["parallel"], N/tk ["arbitrary"], num_rels ["arbitrary"])
#   out_tile += A_r[rows, kcols] @ HW_r[kcols, :]
#   epilogue: out = relu(out + bias)
# A is streamed as ONE int8 bitmask tile per (row-tile, K-tile) (relation axis is
# innermost so the same tile serves all relations); each relation's 0/1 mask is
# reconstructed on the VPU, hiding under the dominant (and now ~6x smaller) DMA.
# Accumulation is f32 directly in the resident out block.
# ---------------------------------------------------------------------------
def _rgcn_acc_kernel(a_ref, hw_ref, b_ref, o_ref):
    k = pl.program_id(1)
    r = pl.program_id(2)

    @pl.when((k == 0) & (r == 0))
    def _():
        o_ref[...] = jnp.zeros_like(o_ref)

    packed = a_ref[...].astype(jnp.int32)                    # int8 bitmask -> i32
    a_r = ((packed >> r) & 1).astype(jnp.float32)            # this relation's 0/1 tile
    o_ref[...] += jnp.dot(a_r, hw_ref[0], preferred_element_type=jnp.float32)

    @pl.when((k == pl.num_programs(1) - 1) & (r == pl.num_programs(2) - 1))
    def _():
        o_ref[...] = jnp.maximum(o_ref[...] + b_ref[...], 0.0)


def rgcn_layer(a_pack, h, bases, coef, bias, *, tile_m=None, tile_k=None):
    """h_out = relu( sum_r A_r @ (H @ W_r) + b ), W_r = sum_b coef[r,b]*bases_b,
    with A_r the 0/1 relation adjacency bit r of the packed int8 mask `a_pack`."""
    n = h.shape[0]
    num_rels = coef.shape[0]
    num_bases, din, dout = bases.shape

    # basis combination hoisted out of the kernel (done once per layer)
    w_cat = jnp.einsum('rb,bio->rio', coef, bases)                    # [R, din, dout]
    w_flat = jnp.transpose(w_cat, (1, 0, 2)).reshape(din, num_rels * dout)
    hw = dense_matmul(h, w_flat)                                      # [N, R*dout] f32
    hw3 = jnp.transpose(hw.reshape(n, num_rels, dout), (1, 0, 2))     # [R, N, dout]

    tm = tile_m or _pick_tile(n, _ROW_TILES)
    tk = tile_k or _pick_tile(n, _COL_TILES)
    assert n % tm == 0 and n % tk == 0, "RGCN tiles must divide N"
    return pl.pallas_call(
        _rgcn_acc_kernel,
        out_shape=jax.ShapeDtypeStruct((n, dout), jnp.float32),
        grid=(n // tm, n // tk, num_rels),
        in_specs=[
            pl.BlockSpec((tm, tk), lambda i, k, r: (i, k)),           # packed A (int8)
            pl.BlockSpec((1, tk, dout), lambda i, k, r: (r, k, 0)),   # HW_r K-rows (f32)
            pl.BlockSpec((1, dout), lambda i, k, r: (0, 0)),          # bias
        ],
        out_specs=pl.BlockSpec((tm, dout), lambda i, k, r: (i, 0)),
        compiler_params=pltpu.CompilerParams(
            dimension_semantics=("parallel", "arbitrary", "arbitrary"),
            vmem_limit_bytes=_VMEM_LIMIT),
    )(a_pack, hw3, bias)


# ---------------------------------------------------------------------------
# Kernel 3: node2edge_fc = FCLayers(2, 40, [40, out_emb_dim])
# fused Linear -> ReLU -> Linear, row-tiled over edges (weights resident).
# (Lane widths 40/32 are narrow; acceptable at these sizes per the review.)
# ---------------------------------------------------------------------------
def _edge_fc_kernel(x_ref, w1_ref, b1_ref, w2_ref, b2_ref, o_ref):
    h = jnp.dot(x_ref[...], w1_ref[...], preferred_element_type=jnp.float32)
    h = jnp.maximum(h + b1_ref[...], 0.0)
    o_ref[...] = jnp.dot(h, w2_ref[...], preferred_element_type=jnp.float32) + b2_ref[...]


def edge_fc(x, w1, b1, w2, b2, *, tile_e=None):
    e, d = x.shape
    dh = w1.shape[1]
    do = w2.shape[1]
    te = tile_e or _pick_tile(e, _ROW_TILES)
    assert e % te == 0, "edge tile must divide E"
    return pl.pallas_call(
        _edge_fc_kernel,
        out_shape=jax.ShapeDtypeStruct((e, do), jnp.float32),
        grid=(e // te,),
        in_specs=[
            pl.BlockSpec((te, d), lambda i: (i, 0)),
            pl.BlockSpec((d, dh), lambda i: (0, 0)),
            pl.BlockSpec((1, dh), lambda i: (0, 0)),
            pl.BlockSpec((dh, do), lambda i: (0, 0)),
            pl.BlockSpec((1, do), lambda i: (0, 0)),
        ],
        out_specs=pl.BlockSpec((te, do), lambda i: (i, 0)),
        compiler_params=pltpu.CompilerParams(
            dimension_semantics=("parallel",),
            vmem_limit_bytes=_VMEM_LIMIT),
    )(x, w1, b1, w2, b2)


# ---------------------------------------------------------------------------
# CycleRGCN forward (glue in plain JAX, hot paths in the kernels above)
# ---------------------------------------------------------------------------
def cycle_rgcn_forward(params, weights, g, key):
    src, dst, etype = g["src"], g["dst"], g["etype"]
    feat = g["feat"]                      # [N, inp_dim]
    edata_mask = g["edge_mask"]           # [E, 1]
    n = feat.shape[0]
    e = src.shape[0]
    eh = e // 2                           # edges i and i+eh are reverse pairs
    rep = params["edge_rep"]
    num_rels = params["num_rels"]
    assert num_rels <= 7, "relation bitmask is packed into int8 (<=7 relations)"

    # bernoulli(p=edge_pick_ratio) per repetition; edges with keep==0 are removed
    # from the adjacency (both directions), as in the reference.
    keep_half = jax.random.bernoulli(
        key, params["edge_pick_ratio"], (rep, eh, 1)).astype(jnp.float32)
    keep_full = jnp.concatenate([keep_half, keep_half], axis=1)            # [rep, E, 1]
    masks = jnp.transpose(edata_mask[None, :, :] * keep_full, (1, 0, 2))   # [E, rep, 1]

    # dense adjacencies with dropped edges zeroed, stacked over rep
    rep_idx = jnp.arange(rep)[:, None]
    adjs = jnp.zeros((rep, n, n), jnp.float32).at[
        rep_idx, src[None, :], dst[None, :]].max(keep_full[:, :, 0])

    cyc = cycle_counts(adjs)[:, :, :NUM_CYCLE_POWERS]          # [rep, N, 10]
    cycle_counts_arr = jnp.transpose(cyc, (1, 0, 2))           # [N, rep, 10]

    # cycle_c = F.normalize(log(clamp(counts, min=1)), dim=0)
    x = jnp.log(jnp.maximum(cycle_counts_arr, 1.0))
    norm = jnp.sqrt(jnp.sum(x * x, axis=0, keepdims=True))
    cycle_c = x / jnp.maximum(norm, 1e-12)                     # [N, rep, 10]

    # apply_edges(get_edge_repr): masked pos/neg averaging over the rep axis
    src_cyc = cycle_c[src]                                     # [E, rep, 10]
    dst_cyc = cycle_c[dst]                                     # [E, rep, 10]
    edges_repr = jnp.concatenate([src_cyc, dst_cyc], axis=-1)  # [E, rep, 20]
    m = masks
    nm = (m == 0.0).astype(jnp.float32)                        # logical_not (ref semantics)
    pos = jnp.sum(edges_repr * m, axis=-2) / jnp.maximum(jnp.sum(m, axis=-2), 1.0)
    neg = jnp.sum(edges_repr * nm, axis=-2) / jnp.maximum(jnp.sum(nm, axis=-2), 1.0)
    full_repr = jnp.concatenate([pos, neg], axis=-1)           # [E, 40]
    edge_repr = edge_fc(full_repr, weights["fc_w1"], weights["fc_b1"],
                        weights["fc_w2"], weights["fc_b2"])    # [E, out_emb_dim]

    # RGCN message passing (2 layers, sum aggregation, edge-mask weighted).
    # Per-relation adjacency packed into an int8 bitmask: bit r set iff an edge of
    # relation r (with mask==1) connects src->dst.
    # TODO(synk): bit-packing assumes a binary edge mask and collapses parallel
    #             edges of the same relation (duplicates behave like a single edge).
    a_rel = jnp.zeros((num_rels, n, n), jnp.float32)
    a_rel = a_rel.at[etype, dst, src].max(edata_mask[:, 0])
    bit_w = (1 << jnp.arange(num_rels, dtype=jnp.int32))
    a_pack = jnp.sum((a_rel > 0).astype(jnp.int32) * bit_w[:, None, None],
                     axis=0).astype(jnp.int8)

    h1 = rgcn_layer(a_pack, feat, weights["bases1"], weights["coef1"],
                    weights["b1"])                             # [N, emb_dim]
    h2 = rgcn_layer(a_pack, h1, weights["bases2"], weights["coef2"],
                    weights["b2"])                             # [N, emb_dim]
    repr_ = jnp.concatenate([h1, h2], axis=1)                  # [N, emb_dim*L]

    return repr_, edge_repr


# ---------------------------------------------------------------------------
if __name__ == "__main__":
    key = jax.random.PRNGKey(0)
    ks = iter(jax.random.split(key, 20))

    # synthetic params (small shapes implied by the module)
    N, inp_dim, emb_dim, num_layers = 16, 8, 16, 2
    num_rels, num_bases = 3, 2
    edge_rep, edge_pick_ratio = 2, 0.5
    out_emb_dim = emb_dim * num_layers        # 32

    # graph: 12 undirected edges -> 24 directed; second half are reverses
    eh = 12
    u = jax.random.randint(next(ks), (eh,), 0, N)
    off = jax.random.randint(next(ks), (eh,), 0, N - 1)
    v = (u + 1 + off) % N                     # guarantees u != v
    src = jnp.concatenate([u, v])
    dst = jnp.concatenate([v, u])
    etype_half = jax.random.randint(next(ks), (eh,), 0, num_rels)
    etype = jnp.concatenate([etype_half, etype_half])
    edge_mask = jax.random.bernoulli(next(ks), 0.8, (2 * eh, 1)).astype(jnp.float32)
    feat = jax.random.normal(next(ks), (N, inp_dim), jnp.float32)

    weights = {
        "bases1": 0.1 * jax.random.normal(next(ks), (num_bases, inp_dim, emb_dim), jnp.float32),
        "coef1": jax.random.normal(next(ks), (num_rels, num_bases), jnp.float32),
        "b1": jnp.zeros((1, emb_dim), jnp.float32),
        "bases2": 0.1 * jax.random.normal(next(ks), (num_bases, emb_dim, emb_dim), jnp.float32),
        "coef2": jax.random.normal(next(ks), (num_rels, num_bases), jnp.float32),
        "b2": jnp.zeros((1, emb_dim), jnp.float32),
        "fc_w1": 0.1 * jax.random.normal(next(ks), (40, 40), jnp.float32),
        "fc_b1": jnp.zeros((1, 40), jnp.float32),
        "fc_w2": 0.1 * jax.random.normal(next(ks), (40, out_emb_dim), jnp.float32),
        "fc_b2": jnp.zeros((1, out_emb_dim), jnp.float32),
    }
    params = {"edge_rep": edge_rep, "edge_pick_ratio": edge_pick_ratio,
              "num_rels": num_rels}
    graph = {"src": src, "dst": dst, "etype": etype,
             "edge_mask": edge_mask, "feat": feat}

    node_repr, edge_repr = cycle_rgcn_forward(params, weights, graph, next(ks))
    jax.block_until_ready((node_repr, edge_repr))

    assert node_repr.shape == (N, out_emb_dim)
    assert edge_repr.shape == (2 * eh, out_emb_dim)
    assert node_repr.dtype == jnp.float32 and edge_repr.dtype == jnp.float32

    # ---- lightweight kernel-level correctness checks vs pure-JAX f32 references ----
    kc = iter(jax.random.split(jax.random.PRNGKey(1), 8))

    # cycle kernel (bf16 MXU chain) vs exact f32 matrix-power reference
    a_chk = jax.random.bernoulli(next(kc), 0.3, (2, N, N)).astype(jnp.float32)
    cyc_k = cycle_counts(a_chk)[:, :, :NUM_CYCLE_POWERS]
    t_ref = a_chk
    diags = []
    for _ in range(NUM_CYCLE_POWERS):
        diags.append(jnp.diagonal(t_ref, axis1=1, axis2=2))
        t_ref = jnp.einsum('rij,rjk->rik', t_ref, a_chk)
    cyc_ref = jnp.stack(diags, axis=-1)
    assert bool(jnp.allclose(cyc_k, cyc_ref, rtol=5e-2, atol=1.0)), "cycle kernel mismatch"

    # RGCN accumulation kernel (bit-packed A) vs dense f32 reference
    a_bits = jax.random.randint(next(kc), (N, N), 0, 2 ** num_rels).astype(jnp.int8)
    h_chk = jax.random.normal(next(kc), (N, emb_dim), jnp.float32)
    out_k = rgcn_layer(a_bits, h_chk, weights["bases2"], weights["coef2"], weights["b2"])
    w_r = jnp.einsum('rb,bio->rio', weights["coef2"], weights["bases2"])
    acc = jnp.zeros((N, emb_dim), jnp.float32)
    for r in range(num_rels):
        a_r = ((a_bits.astype(jnp.int32) >> r) & 1).astype(jnp.float32)
        acc = acc + a_r @ (h_chk @ w_r[r])
    out_ref = jnp.maximum(acc + weights["b2"], 0.0)
    assert bool(jnp.allclose(out_k, out_ref, rtol=1e-3, atol=1e-3)), "rgcn kernel mismatch"

    # fused edge MLP kernel vs f32 reference
    x_chk = jax.random.normal(next(kc), (2 * eh, 40), jnp.float32)
    ef_k = edge_fc(x_chk, weights["fc_w1"], weights["fc_b1"],
                   weights["fc_w2"], weights["fc_b2"])
    ef_ref = (jnp.maximum(x_chk @ weights["fc_w1"] + weights["fc_b1"], 0.0)
              @ weights["fc_w2"] + weights["fc_b2"])
    assert bool(jnp.allclose(ef_k, ef_ref, rtol=1e-3, atol=1e-3)), "edge_fc kernel mismatch"

    print("KERNEL_OK")
</pallas_src>

<mosaic_0001>
module attributes {stable_mosaic.version = 11 : i64} {
  func.func @_cycle_kernel(%arg0: i32, %arg1: i32, %arg2: memref<1x16x16xbf16, #tpu.memory_space<vmem>>, %arg3: memref<1x16x16xf32, #tpu.memory_space<vmem>>) attributes {dimension_semantics = [#tpu.dimension_semantics<parallel>, #tpu.dimension_semantics<parallel>], iteration_bounds = array<i64: 2, 1>, scalar_prefetch = 0 : i64, scratch_operands = 0 : i64, tpu.core_type = #tpu.core_type<tc>, window_params = [{transform_indices = @transform_0, window_bounds = array<i64: 1, 16, 16>}, {transform_indices = @transform_1, window_bounds = array<i64: 1, 16, 16>}]} {
    %c16_i32 = arith.constant 16 : i32
    %0 = arith.muli %arg1, %c16_i32 : i32
    %1 = tpu.assume_multiple %0, 16 : i32
    %c0 = arith.constant 0 : index
    %c0_0 = arith.constant 0 : index
    %c0_1 = arith.constant 0 : index
    %2 = vector.load %arg2[%c0, %c0_0, %c0_1] : memref<1x16x16xbf16, #tpu.memory_space<vmem>>, vector<1x16x16xbf16>
    %3 = vector.shape_cast %2 : vector<1x16x16xbf16> to vector<16x16xbf16>
    %c0_2 = arith.constant 0 : index
    %4 = arith.index_cast %1 : i32 to index
    %c0_3 = arith.constant 0 : index
    %5 = vector.load %arg2[%c0_2, %4, %c0_3] : memref<1x16x16xbf16, #tpu.memory_space<vmem>>, vector<1x16x16xbf16>
    %6 = vector.shape_cast %5 : vector<1x16x16xbf16> to vector<16x16xbf16>
    %7 = arith.extf %6 : vector<16x16xbf16> to vector<16x16xf32>
    %8 = tpu.iota {dimensions = array<i32: 0>} : vector<16x16xi32>
    %9 = tpu.iota {dimensions = array<i32: 1>} : vector<16x16xi32>
    %10 = vector.broadcast %1 : i32 to vector<16x16xi32>
    %11 = arith.addi %8, %10 : vector<16x16xi32>
    %12 = arith.cmpi eq, %9, %11 : vector<16x16xi32>
    %13 = tpu.iota {dimensions = array<i32: 1>} : vector<16x16xi32>
    %cst = arith.constant 0.000000e+00 : f32
    %14 = vector.broadcast %cst : f32 to vector<16x16xf32>
    %cst_4 = arith.constant 0.000000e+00 : f32
    %15 = vector.broadcast %cst_4 : f32 to vector<16x16xf32>
    %16 = arith.select %12, %7, %15 : vector<16x16xi1>, vector<16x16xf32>
    %cst_5 = arith.constant dense<0.000000e+00> : vector<16xf32>
    %17 = vector.multi_reduction <add>, %16, %cst_5 [1] : vector<16x16xf32> to vector<16xf32>
    %18 = vector.shape_cast %17 : vector<16xf32> to vector<16x1xf32>
    %c0_i32 = arith.constant 0 : i32
    %19 = vector.broadcast %c0_i32 : i32 to vector<16x16xi32>
    %20 = arith.cmpi eq, %13, %19 : vector<16x16xi32>
    %cst_6 = arith.constant 0.000000e+00 : f32
    %21 = vector.shape_cast %18 : vector<16x1xf32> to vector<16x1xf32>
    %22 = vector.broadcast %21 : vector<16x1xf32> to vector<16x16xf32>
    %23 = vector.broadcast %cst_6 : f32 to vector<16x16xf32>
    %24 = arith.select %20, %22, %23 : vector<16x16xi1>, vector<16x16xf32>
    %25 = arith.addf %14, %24 : vector<16x16xf32>
    %26 = arith.truncf %7 : vector<16x16xf32> to vector<16x16xbf16>
    %cst_7 = arith.constant dense<0.000000e+00> : vector<16x16xf32>
    %27 = tpu.matmul %26, %3, %cst_7 {dimension_numbers = #tpu.dot_dimension_numbers<[1], [0], [0], [1], [0, 0, 1, 1], [], []>} : vector<16x16xbf16>, vector<16x16xbf16>, vector<16x16xf32> -> vector<16x16xf32>
    %cst_8 = arith.constant 0.000000e+00 : f32
    %28 = vector.broadcast %cst_8 : f32 to vector<16x16xf32>
    %29 = arith.select %12, %27, %28 : vector<16x16xi1>, vector<16x16xf32>
    %cst_9 = arith.constant dense<0.000000e+00> : vector<16xf32>
    %30 = vector.multi_reduction <add>, %29, %cst_9 [1] : vector<16x16xf32> to vector<16xf32>
    %31 = vector.shape_cast %30 : vector<16xf32> to vector<16x1xf32>
    %c1_i32 = arith.constant 1 : i32
    %32 = vector.broadcast %c1_i32 : i32 to vector<16x16xi32>
    %33 = arith.cmpi eq, %13, %32 : vector<16x16xi32>
    %cst_10 = arith.constant 0.000000e+00 : f32
    %34 = vector.shape_cast %31 : vector<16x1xf32> to vector<16x1xf32>
    %35 = vector.broadcast %34 : vector<16x1xf32> to vector<16x16xf32>
    %36 = vector.broadcast %cst_10 : f32 to vector<16x16xf32>
    %37 = arith.select %33, %35, %36 : vector<16x16xi1>, vector<16x16xf32>
    %38 = arith.addf %25, %37 : vector<16x16xf32>
    %39 = arith.truncf %27 : vector<16x16xf32> to vector<16x16xbf16>
    %cst_11 = arith.constant dense<0.000000e+00> : vector<16x16xf32>
    %40 = tpu.matmul %39, %3, %cst_11 {dimension_numbers = #tpu.dot_dimension_numbers<[1], [0], [0], [1], [0, 0, 1, 1], [], []>} : vector<16x16xbf16>, vector<16x16xbf16>, vector<16x16xf32> -> vector<16x16xf32>
    %cst_12 = arith.constant 0.000000e+00 : f32
    %41 = vector.broadcast %cst_12 : f32 to vector<16x16xf32>
    %42 = arith.select %12, %40, %41 : vector<16x16xi1>, vector<16x16xf32>
    %cst_13 = arith.constant dense<0.000000e+00> : vector<16xf32>
    %43 = vector.multi_reduction <add>, %42, %cst_13 [1] : vector<16x16xf32> to vector<16xf32>
    %44 = vector.shape_cast %43 : vector<16xf32> to vector<16x1xf32>
    %c2_i32 = arith.constant 2 : i32
    %45 = vector.broadcast %c2_i32 : i32 to vector<16x16xi32>
    %46 = arith.cmpi eq, %13, %45 : vector<16x16xi32>
    %cst_14 = arith.constant 0.000000e+00 : f32
    %47 = vector.shape_cast %44 : vector<16x1xf32> to vector<16x1xf32>
    %48 = vector.broadcast %47 : vector<16x1xf32> to vector<16x16xf32>
    %49 = vector.broadcast %cst_14 : f32 to vector<16x16xf32>
    %50 = arith.select %46, %48, %49 : vector<16x16xi1>, vector<16x16xf32>
    %51 = arith.addf %38, %50 : vector<16x16xf32>
    %52 = arith.truncf %40 : vector<16x16xf32> to vector<16x16xbf16>
    %cst_15 = arith.constant dense<0.000000e+00> : vector<16x16xf32>
    %53 = tpu.matmul %52, %3, %cst_15 {dimension_numbers = #tpu.dot_dimension_numbers<[1], [0], [0], [1], [0, 0, 1, 1], [], []>} : vector<16x16xbf16>, vector<16x16xbf16>, vector<16x16xf32> -> vector<16x16xf32>
    %cst_16 = arith.constant 0.000000e+00 : f32
    %54 = vector.broadcast %cst_16 : f32 to vector<16x16xf32>
    %55 = arith.select %12, %53, %54 : vector<16x16xi1>, vector<16x16xf32>
    %cst_17 = arith.constant dense<0.000000e+00> : vector<16xf32>
    %56 = vector.multi_reduction <add>, %55, %cst_17 [1] : vector<16x16xf32> to vector<16xf32>
    %57 = vector.shape_cast %56 : vector<16xf32> to vector<16x1xf32>
    %c3_i32 = arith.constant 3 : i32
    %58 = vector.broadcast %c3_i32 : i32 to vector<16x16xi32>
    %59 = arith.cmpi eq, %13, %58 : vector<16x16xi32>
    %cst_18 = arith.constant 0.000000e+00 : f32
    %60 = vector.shape_cast %57 : vector<16x1xf32> to vector<16x1xf32>
    %61 = vector.broadcast %60 : vector<16x1xf32> to vector<16x16xf32>
    %62 = vector.broadcast %cst_18 : f32 to vector<16x16xf32>
    %63 = arith.select %59, %61, %62 : vector<16x16xi1>, vector<16x16xf32>
    %64 = arith.addf %51, %63 : vector<16x16xf32>
    %65 = arith.truncf %53 : vector<16x16xf32> to vector<16x16xbf16>
    %cst_19 = arith.constant dense<0.000000e+00> : vector<16x16xf32>
    %66 = tpu.matmul %65, %3, %cst_19 {dimension_numbers = #tpu.dot_dimension_numbers<[1], [0], [0], [1], [0, 0, 1, 1], [], []>} : vector<16x16xbf16>, vector<16x16xbf16>, vector<16x16xf32> -> vector<16x16xf32>
    %cst_20 = arith.constant 0.000000e+00 : f32
    %67 = vector.broadcast %cst_20 : f32 to vector<16x16xf32>
    %68 = arith.select %12, %66, %67 : vector<16x16xi1>, vector<16x16xf32>
    %cst_21 = arith.constant dense<0.000000e+00> : vector<16xf32>
    %69 = vector.multi_reduction <add>, %68, %cst_21 [1] : vector<16x16xf32> to vector<16xf32>
    %70 = vector.shape_cast %69 : vector<16xf32> to vector<16x1xf32>
    %c4_i32 = arith.constant 4 : i32
    %71 = vector.broadcast %c4_i32 : i32 to vector<16x16xi32>
    %72 = arith.cmpi eq, %13, %71 : vector<16x16xi32>
    %cst_22 = arith.constant 0.000000e+00 : f32
    %73 = vector.shape_cast %70 : vector<16x1xf32> to vector<16x1xf32>
    %74 = vector.broadcast %73 : vector<16x1xf32> to vector<16x16xf32>
    %75 = vector.broadcast %cst_22 : f32 to vector<16x16xf32>
    %76 = arith.select %72, %74, %75 : vector<16x16xi1>, vector<16x16xf32>
    %77 = arith.addf %64, %76 : vector<16x16xf32>
    %78 = arith.truncf %66 : vector<16x16xf32> to vector<16x16xbf16>
    %cst_23 = arith.constant dense<0.000000e+00> : vector<16x16xf32>
    %79 = tpu.matmul %78, %3, %cst_23 {dimension_numbers = #tpu.dot_dimension_numbers<[1], [0], [0], [1], [0, 0, 1, 1], [], []>} : vector<16x16xbf16>, vector<16x16xbf16>, vector<16x16xf32> -> vector<16x16xf32>
    %cst_24 = arith.constant 0.000000e+00 : f32
    %80 = vector.broadcast %cst_24 : f32 to vector<16x16xf32>
    %81 = arith.select %12, %79, %80 : vector<16x16xi1>, vector<16x16xf32>
    %cst_25 = arith.constant dense<0.000000e+00> : vector<16xf32>
    %82 = vector.multi_reduction <add>, %81, %cst_25 [1] : vector<16x16xf32> to vector<16xf32>
    %83 = vector.shape_cast %82 : vector<16xf32> to vector<16x1xf32>
    %c5_i32 = arith.constant 5 : i32
    %84 = vector.broadcast %c5_i32 : i32 to vector<16x16xi32>
    %85 = arith.cmpi eq, %13, %84 : vector<16x16xi32>
    %cst_26 = arith.constant 0.000000e+00 : f32
    %86 = vector.shape_cast %83 : vector<16x1xf32> to vector<16x1xf32>
    %87 = vector.broadcast %86 : vector<16x1xf32> to vector<16x16xf32>
    %88 = vector.broadcast %cst_26 : f32 to vector<16x16xf32>
    %89 = arith.select %85, %87, %88 : vector<16x16xi1>, vector<16x16xf32>
    %90 = arith.addf %77, %89 : vector<16x16xf32>
    %91 = arith.truncf %79 : vector<16x16xf32> to vector<16x16xbf16>
    %cst_27 = arith.constant dense<0.000000e+00> : vector<16x16xf32>
    %92 = tpu.matmul %91, %3, %cst_27 {dimension_numbers = #tpu.dot_dimension_numbers<[1], [0], [0], [1], [0, 0, 1, 1], [], []>} : vector<16x16xbf16>, vector<16x16xbf16>, vector<16x16xf32> -> vector<16x16xf32>
    %cst_28 = arith.constant 0.000000e+00 : f32
    %93 = vector.broadcast %cst_28 : f32 to vector<16x16xf32>
    %94 = arith.select %12, %92, %93 : vector<16x16xi1>, vector<16x16xf32>
    %cst_29 = arith.constant dense<0.000000e+00> : vector<16xf32>
    %95 = vector.multi_reduction <add>, %94, %cst_29 [1] : vector<16x16xf32> to vector<16xf32>
    %96 = vector.shape_cast %95 : vector<16xf32> to vector<16x1xf32>
    %c6_i32 = arith.constant 6 : i32
    %97 = vector.broadcast %c6_i32 : i32 to vector<16x16xi32>
    %98 = arith.cmpi eq, %13, %97 : vector<16x16xi32>
    %cst_30 = arith.constant 0.000000e+00 : f32
    %99 = vector.shape_cast %96 : vector<16x1xf32> to vector<16x1xf32>
    %100 = vector.broadcast %99 : vector<16x1xf32> to vector<16x16xf32>
    %101 = vector.broadcast %cst_30 : f32 to vector<16x16xf32>
    %102 = arith.select %98, %100, %101 : vector<16x16xi1>, vector<16x16xf32>
    %103 = arith.addf %90, %102 : vector<16x16xf32>
    %104 = arith.truncf %92 : vector<16x16xf32> to vector<16x16xbf16>
    %cst_31 = arith.constant dense<0.000000e+00> : vector<16x16xf32>
    %105 = tpu.matmul %104, %3, %cst_31 {dimension_numbers = #tpu.dot_dimension_numbers<[1], [0], [0], [1], [0, 0, 1, 1], [], []>} : vector<16x16xbf16>, vector<16x16xbf16>, vector<16x16xf32> -> vector<16x16xf32>
    %cst_32 = arith.constant 0.000000e+00 : f32
    %106 = vector.broadcast %cst_32 : f32 to vector<16x16xf32>
    %107 = arith.select %12, %105, %106 : vector<16x16xi1>, vector<16x16xf32>
    %cst_33 = arith.constant dense<0.000000e+00> : vector<16xf32>
    %108 = vector.multi_reduction <add>, %107, %cst_33 [1] : vector<16x16xf32> to vector<16xf32>
    %109 = vector.shape_cast %108 : vector<16xf32> to vector<16x1xf32>
    %c7_i32 = arith.constant 7 : i32
    %110 = vector.broadcast %c7_i32 : i32 to vector<16x16xi32>
    %111 = arith.cmpi eq, %13, %110 : vector<16x16xi32>
    %cst_34 = arith.constant 0.000000e+00 : f32
    %112 = vector.shape_cast %109 : vector<16x1xf32> to vector<16x1xf32>
    %113 = vector.broadcast %112 : vector<16x1xf32> to vector<16x16xf32>
    %114 = vector.broadcast %cst_34 : f32 to vector<16x16xf32>
    %115 = arith.select %111, %113, %114 : vector<16x16xi1>, vector<16x16xf32>
    %116 = arith.addf %103, %115 : vector<16x16xf32>
    %117 = arith.truncf %105 : vector<16x16xf32> to vector<16x16xbf16>
    %cst_35 = arith.constant dense<0.000000e+00> : vector<16x16xf32>
    %118 = tpu.matmul %117, %3, %cst_35 {dimension_numbers = #tpu.dot_dimension_numbers<[1], [0], [0], [1], [0, 0, 1, 1], [], []>} : vector<16x16xbf16>, vector<16x16xbf16>, vector<16x16xf32> -> vector<16x16xf32>
    %cst_36 = arith.constant 0.000000e+00 : f32
    %119 = vector.broadcast %cst_36 : f32 to vector<16x16xf32>
    %120 = arith.select %12, %118, %119 : vector<16x16xi1>, vector<16x16xf32>
    %cst_37 = arith.constant dense<0.000000e+00> : vector<16xf32>
    %121 = vector.multi_reduction <add>, %120, %cst_37 [1] : vector<16x16xf32> to vector<16xf32>
    %122 = vector.shape_cast %121 : vector<16xf32> to vector<16x1xf32>
    %c8_i32 = arith.constant 8 : i32
    %123 = vector.broadcast %c8_i32 : i32 to vector<16x16xi32>
    %124 = arith.cmpi eq, %13, %123 : vector<16x16xi32>
    %cst_38 = arith.constant 0.000000e+00 : f32
    %125 = vector.shape_cast %122 : vector<16x1xf32> to vector<16x1xf32>
    %126 = vector.broadcast %125 : vector<16x1xf32> to vector<16x16xf32>
    %127 = vector.broadcast %cst_38 : f32 to vector<16x16xf32>
    %128 = arith.select %124, %126, %127 : vector<16x16xi1>, vector<16x16xf32>
    %129 = arith.addf %116, %128 : vector<16x16xf32>
    %130 = arith.truncf %118 : vector<16x16xf32> to vector<16x16xbf16>
    %cst_39 = arith.constant dense<0.000000e+00> : vector<16x16xf32>
    %131 = tpu.matmul %130, %3, %cst_39 {dimension_numbers = #tpu.dot_dimension_numbers<[1], [0], [0], [1], [0, 0, 1, 1], [], []>} : vector<16x16xbf16>, vector<16x16xbf16>, vector<16x16xf32> -> vector<16x16xf32>
    %cst_40 = arith.constant 0.000000e+00 : f32
    %132 = vector.broadcast %cst_40 : f32 to vector<16x16xf32>
    %133 = arith.select %12, %131, %132 : vector<16x16xi1>, vector<16x16xf32>
    %cst_41 = arith.constant dense<0.000000e+00> : vector<16xf32>
    %134 = vector.multi_reduction <add>, %133, %cst_41 [1] : vector<16x16xf32> to vector<16xf32>
    %135 = vector.shape_cast %134 : vector<16xf32> to vector<16x1xf32>
    %c9_i32 = arith.constant 9 : i32
    %136 = vector.broadcast %c9_i32 : i32 to vector<16x16xi32>
    %137 = arith.cmpi eq, %13, %136 : vector<16x16xi32>
    %cst_42 = arith.constant 0.000000e+00 : f32
    %138 = vector.shape_cast %135 : vector<16x1xf32> to vector<16x1xf32>
    %139 = vector.broadcast %138 : vector<16x1xf32> to vector<16x16xf32>
    %140 = vector.broadcast %cst_42 : f32 to vector<16x16xf32>
    %141 = arith.select %137, %139, %140 : vector<16x16xi1>, vector<16x16xf32>
    %142 = arith.addf %129, %141 : vector<16x16xf32>
    %c0_43 = arith.constant 0 : index
    %c0_44 = arith.constant 0 : index
    %c0_45 = arith.constant 0 : index
    %143 = vector.load %arg3[%c0_43, %c0_44, %c0_45] : memref<1x16x16xf32, #tpu.memory_space<vmem>>, vector<1x16x16xf32>
    %144 = vector.shape_cast %143 : vector<1x16x16xf32> to vector<16x16xf32>
    %145 = vector.shape_cast %142 : vector<16x16xf32> to vector<1x16x16xf32>
    tpu.vector_store %arg3[%c0_43, %c0_44, %c0_45], %145 {strides = array<i32>} : memref<1x16x16xf32, #tpu.memory_space<vmem>>, vector<1x16x16xf32>,
    return
  }
  func.func @transform_0(%arg0: i32, %arg1: i32) -> (i32, i32, i32) {
    %c0_i32 = arith.constant 0 : i32
    %c0_i32_0 = arith.constant 0 : i32
    %c0_i32_1 = arith.constant 0 : i32
    return %arg0, %c0_i32, %c0_i32_0 : i32, i32, i32
  }
  func.func @transform_1(%arg0: i32, %arg1: i32) -> (i32, i32, i32) {
    %c0_i32 = arith.constant 0 : i32
    %c0_i32_0 = arith.constant 0 : i32
    return %arg0, %arg1, %c0_i32 : i32, i32, i32
  }
}

</mosaic_0001>

<bundles_post_ra>
// kernel: tpu_custom_call.1
= control target key start
LH: loop header
LB: loop body
LE: loop exit
PB: predicated region body
PF: predicated region fallthrough
CT: control target
= control target key end

     0   :  { %6 = vsyncpa [#allocation3], 0  ;;  %s1432_s0 = inlined_call_operand.hbm [shape: bf16[2,16,16], index: 0, kind: input, shape index: {}]   ;;  %s1433_s1 = inlined_call_operand.hbm [shape: f32[2,16,16], index: 1, kind: output, shape index: {}]  }
   0x1   :  { %8 = vsyncpa [#allocation3 + $0x1], 0 }
   0x2   :  { %9 = vsyncpa [#allocation4], 0 }
   0x3   :  { %11 = vsyncpa [#allocation4 + $0x1], 0  ;;  %s1125_s6 = smov 0   ;;  %s1127_s7 = smov 0  }
   0x4   :  { %s1129_s8 = smov 0   ;;  %s1131_s9 = smov 0  }
   0x5   :  { %s1133_s10 = smov 0   ;;  %s1135_s11 = smov 0  }
   0x6 LB: > { %s822_s12 = sadd.s32 4294967295, %s1105_s11   ;;  %s823_s13 = sadd.s32 4294967294, %s1105_s11   ;;  %s1105_s11 = sphi %s1135_s11, %s17_s11   ;;  %s1101_s10 = sphi %s1133_s10, %s1452_s10   ;;  %s1097_s9 = sphi %s1131_s9, %s1451_s9   ;;  %s1093_s8 = sphi %s1129_s8, %s1450_s8   ;;  %s1089_s7 = sphi %s1127_s7, %s1449_s7   ;;  %s1085_s6 = sphi %s1125_s6, %s1448_s6  }
   0x7   : > { %s29_s14 = sadd.s32 1, %s1101_s10  ;;  %s36_s15 = sadd.s32 1, %s1093_s8 }
   0x8   : > { %p31_p0 = scmp.ge.s32.totalorder %s29_s14, 2  ;;  %p43_p1 = scmp.ne.s32.totalorder %s1093_s8, %s1089_s7 }
   0x9   : > { %p44_p2 = scmp.eq.s32.totalorder %s1105_s11, 0  ;;  %p49_p3 = scmp.ne.s32.totalorder %s1089_s7, %s1085_s6 }
   0xa   : > { %s1454_s14 = smov (%p31_p0, %s29_s14), 0  ;;  %p50_p5 = scmp.eq.s32.totalorder %s822_s12, 0 }
   0xb   : > { %p1166_p4 = por %p44_p2, %p43_p1  ;;  %s33_s17 = ssub.s32 %s1101_s10, %s1454_s14 }
   0xc   : > { %p75_p6 = scmp.eq.s32.totalorder %s822_s12, 1  ;;  %p34_p7 = scmp.eq.s32.totalorder %s33_s17, 0 }
   0xd   : > { %p1172_p8 = por %p50_p5, %p49_p3  ;;  %p81_p10 = scmp.eq.s32.totalorder %s823_s13, 1 }
   0xe   : > { %p1176_p9 = por %p75_p6, %p43_p1  ;;  %p934_p13 = scmp.lt.s32.totalorder %s1105_s11, 2 }
   0xf   : > { %s1181_s20 = scalar_select %p34_p7, %s1093_s8, %s36_s15  }
  0x10   : > { %s1437_s19 = scalar_select %p1176_p9, 1, 0 }
  0x11   : > { %p1183_p11 = por %p81_p10, %p49_p3  ;;  %s101_s22 = sand.u32 1, %s1093_s8  }
  0x12   : > { %s826_s23 = sshll.u32 %s101_s22, 3  ;;  %s848_s24 = sshll.u32 %s1101_s10, 7 }
  0x13   : > { %s1438_s21 = scalar_select %p1183_p11, 1, 0 }
  0x14   : > { %s1194_s27 = scalar_lea.hbm %s1432_s0, %s848_s24  ;;  %s105_s28 = scalar_lea.vmem [#allocation2], %s826_s23 }
  0x15   : > { %s112_s29 = sshll.u32 %s105_s28, 4  ;;  %p1200_p0 = pnand %p934_p13, %p1166_p4  ;;  %s1196_s29 = int_to_ptr.vmem [resolvable:$true] %s112_s29 }
  0x16   : > { %s1205_s2 = scalar_lea.sflag [#allocation3], %s101_s22  ;;  %s993_s3 = scalar_lea.hbm %s1194_s27, 128 }
  0x17   : > { %p994_p2 = scmp.ne.s32.totalorder %s1194_s27, %s993_s3  ;;  %p995_p3 = pneg %p1200_p0 }
  0x18   : > { %s998_s12 = scalar_lea.hbm %s1432_s0, 256  ;;  %p999_p4 = scmp.lt.u32.totalorder %s1194_s27, %s1432_s0 }
  0x19   : > { %p996_p5 = pnand %p995_p3, %p994_p2  ;;  %p1000_p7 = scmp.lt.u32.totalorder %s998_s12, %s993_s3 }
  0x1a   : > { %p1002_p13 = scmp.lt.u32.totalorder %s993_s3, %s1194_s27 }
  0x1b   : > { %p997_p6 = pneg %p996_p5  ;;  %p1001_p10 = por %p1000_p7, %p999_p4 }
  0x1d   : > { %p1003_p12 = por %p1002_p13, %p1001_p10 }
  0x1f   : > { %p1004_p1 = pnand %p1003_p12, %p997_p6 }
  0x21   : > { %1007 = shalt.err (!%p1004_p1)
}
  0x22   : > { %s1008_s16 = scalar_lea.vmem %s1196_s29, 128  ;;  %s1107_s17 = smov [#allocation2]  }
  0x23   : > { %p1009_p2 = scmp.ne.s32.totalorder %s1196_s29, %s1008_s16  ;;  %s1013_s22 = sshll.u32 %s1107_s17, 4  ;;  %s1014_s22 = int_to_ptr.vmem [resolvable:$false] %s1013_s22 }
  0x24   : > { %s1015_s23 = scalar_lea.vmem %s1014_s22, 256  ;;  %p1016_p9 = scmp.lt.s32.totalorder %s1196_s29, %s1014_s22 }
  0x25   : > { %p1011_p5 = pnand %p1009_p2, %p995_p3  ;;  %p1017_p4 = scmp.lt.s32.totalorder %s1015_s23, %s1008_s16 }
  0x27   : > { %p1012_p11 = pneg %p1011_p5  ;;  %p1018_p7 = por %p1017_p4, %p1016_p9 }
  0x29   : > { %p1019_p10 = pnand %p1018_p7, %p1012_p11 }
  0x2b   : > { %1022 = shalt.err (!%p1019_p10)
}
  0x2c   : > { %s1108_s24 = smov 64   ;;  %s1109_s25 = smov 4  }
  0x2d   : > { %929 = dma.hbm_to_vmem [thread:$0]  (!%p1200_p0), %s1194_s27, 128, %s1196_s29, %s1205_s2, %s1108_s24, %s1108_s24, %s1109_s25  }
  0x2e   : > { %p120_p12 = scmp.lt.s32.totalorder %s1105_s11, 3  ;;  %p1440_p1 = scmp.ge.s32.totalorder %s1105_s11, 1 }
  0x30   : > { %p121_p3 = pnand %p1440_p1, %p120_p12 }
  0x31   : > { %s1237_s26 = sand.u32 (!%p121_p3), 1, %s1089_s7  }
  0x32   : > { %124 = sbr.rel (%p121_p3) target bundleno = 2168 (0x878), region = 24  ;;  %s830_s28 = sshll.u32 (!%p121_p3), %s1237_s26, 3 }
  0x33   : > { %s127_s3 = scalar_lea.sflag (!%p121_p3), [#allocation3], %s1237_s26  ;;  %s130_s4 = scalar_lea.vmem (!%p121_p3), [#allocation2], %s830_s28 }
  0x39   : > { %1076 = dma.done.wait (%p1172_p8), %s127_s3, 128  }
  0x3a   : > { %1078 = vsyncadd (%p1172_p8), %s127_s3, 4294967168  ;;  %v1110_v0 = vmov 0.0   ;;  %vm1111_vm0 = vmmov 0   ;;  %v1251_v1 = vld [vmem:[%s130_s4] sm:$0xff]   ;;  %vm174_vm1 = vcmask 130048   ;;  %v162_v3 = vlaneseq  ;;  %s831_s18 = sshll.u32 %s1237_s26, 4 }
  0x3b   : > { %868 = vmatprep.subr.bf16.mxu0 %v1110_v0  ;;  %870 = vmatprep.mubr.msk.bf16.mxu0 %vm1111_vm0, %v1110_v0  ;;  %v158_v2 = vld [vmem:[%s130_s4] sm:$0xff]   ;;  %s849_s27 = sshll.u32 %s1097_s9, 8  ;;  %s148_s29 = scalar_lea.vmem [#allocation5], %s831_s18 }
  0x3c   : > { %874 = vmatprep.subr.bf16.mxu1 %v1110_v0  ;;  %876 = vmatprep.mubr.msk.bf16.mxu1 %vm1111_vm0, %v1110_v0  ;;  %v163_v4 = vshrl.u32 %v162_v3, 7  ;;  %v1262_v5 = vand.u32 127, %v162_v3  ;;  %v160_v6 = vunpack.c.l.bf16 %v158_v2  ;;  %v161_v11 = vunpack.c.h.bf16 %v158_v2  ;;  %s736_s30 = sshll.u32 %s148_s29, 4  ;;  %s1379_s12 = scalar_lea.hbm %s1433_s1, %s849_s27  ;;  %s1381_s30 = int_to_ptr.vmem [resolvable:$true] %s736_s30 }
  0x3d   : > { %869 = vmatpush3.bf16.msra.mxu0 %v1251_v1  ;;  %875 = vmatpush3.bf16.msra.mxu1 %v1251_v1  ;;  %s721_s9 = scalar_lea.sflag [#allocation4], %s1237_s26  ;;  %s1023_s13 = scalar_lea.vmem %s1381_s30, 256 }
  0x3e   : > { %880 = vmatprep.subr.bf16.mxu0 %v1110_v0  ;;  %886 = vmatprep.subr.bf16.mxu1 %v1110_v0  ;;  %vm1265_vm2 = vcmp.eq.s32.totalorder %v1262_v5, %v163_v4  ;;  %v164_v8 = vadd.s32 8, %v163_v4  ;;  %vm181_vm4 = vcmp.eq.s32.totalorder %v1262_v5, 0  ;;  %vm249_vm5 = vcmp.eq.s32.totalorder %v1262_v5, 1  ;;  %p1024_p8 = scmp.ne.s32.totalorder %s1381_s30, %s1023_s13  ;;  %p1445_p9 = scmp.ne.s32.totalorder %s1437_s19, 0 }
  0x3f   : > { %v172_v9 = vsel %vm1265_vm2, %v160_v6, 0.0  ;;  %vm307_vm6 = vcmp.eq.s32.totalorder %v1262_v5, 2  ;;  %vm365_vm7 = vcmp.eq.s32.totalorder %v1262_v5, 3  ;;  %vm423_vm8 = vcmp.eq.s32.totalorder %v1262_v5, 4  ;;  %s1112_s15 = smov [#allocation5]  }
  0x40   : > { %871 = vmatmul.mubr.msk.bf16.vlgmr.msra.gmra.mrb[0].mxu0 %vm174_vm1, %v158_v2  ;;  %v175_v10 = vsel %vm174_vm1, %v172_v9, 0.0  ;;  %vm1273_vm3 = vcmp.eq.s32.totalorder %v1262_v5, %v164_v8  ;;  %vm481_vm9 = vcmp.eq.s32.totalorder %v1262_v5, 5  ;;  %vm539_vm10 = vcmp.eq.s32.totalorder %v1262_v5, 6  ;;  %p1025_p11 = pnand %p1024_p8, %p1445_p9  ;;  %s1027_s16 = sshll.u32 %s1112_s15, 4  ;;  %s1028_s16 = int_to_ptr.vmem [resolvable:$false] %s1027_s16 }
  0x41   : > { %881 = vmatpush3.bf16.msra.mxu0 %v1251_v1  ;;  %882 = vmatprep.mubr.msk.bf16.mxu0 %vm1111_vm0, %v1110_v0  ;;  %v173_v13 = vsel %vm1273_vm3, %v161_v11, 0.0  ;;  %vm597_vm11 = vcmp.eq.s32.totalorder %v1262_v5, 7  ;;  %vm655_vm12 = vcmp.eq.s32.totalorder %v1262_v5, 8  ;;  %vm713_vm13 = vcmp.eq.s32.totalorder %v1262_v5, 9  ;;  %s1029_s17 = scalar_lea.vmem %s1028_s16, 512  ;;  %p1030_p6 = scmp.lt.s32.totalorder %s1381_s30, %s1028_s16 }
  0x42   : > { %892 = vmatprep.subr.bf16.mxu0 %v1110_v0  ;;  %176 = vadd.xlane.f32.xlu0 %v175_v10  ;;  %v178_v14 = vsel %vm174_vm1, %v173_v13, 0.0  ;;  %p1026_p0 = pneg %p1025_p11  ;;  %p1031_p13 = scmp.lt.s32.totalorder %s1029_s17, %s1023_s13 }
  0x44   : > { %p1032_p2 = por %p1031_p13, %p1030_p6 }
  0x46   : > { %179 = vadd.xlane.f32.xlu0 %v178_v14  ;;  %p1033_p5 = pnand %p1032_p2, %p1026_p0 }
 0x113   : > { %v234_v15 = vpop.f32.mrb[0].mxu0 }
 0x114   : > { %v872_v16 = vpop.f32.mrb[1].mxu0  ;;  %v241_v17 = vsel %vm1265_vm2, %v234_v15, 0.0 }
 0x115   : > { %v237_v18 = vpop.f32.mrb[2].mxu0  ;;  %v243_v19 = vsel %vm174_vm1, %v241_v17, 0.0 }
 0x116   : > { %v254_v20 = vpack.c.bf16 %v237_v18, %v234_v15  ;;  %244 = vadd.xlane.f32.xlu1 %v243_v19  ;;  %v873_v21 = vpop.f32.mrb[3].mxu0  ;;  %v242_v22 = vsel %vm1273_vm3, %v237_v18, 0.0 }
 0x117   : > { %v246_v23 = vsel %vm174_vm1, %v242_v22, 0.0 }
 0x118   : > { %877 = vmatmul.mubr.msk.bf16.vlgmr.msra.gmra.mrb[0].mxu1 %vm174_vm1, %v254_v20 }
 0x119   : > { %887 = vmatpush3.bf16.msra.mxu1 %v1251_v1  ;;  %888 = vmatprep.mubr.msk.bf16.mxu1 %vm1111_vm0, %v1110_v0 }
 0x11a   : > { %247 = vadd.xlane.f32.xlu1 %v246_v23  ;;  %898 = vmatprep.subr.bf16.mxu1 %v1110_v0 }
 0x1eb   : > { %v292_v24 = vpop.f32.mrb[0].mxu1 }
 0x1ec   : > { %v878_v25 = vpop.f32.mrb[1].mxu1  ;;  %v299_v26 = vsel %vm1265_vm2, %v292_v24, 0.0 }
 0x1ed   : > { %v295_v27 = vpop.f32.mrb[2].mxu1  ;;  %v301_v28 = vsel %vm174_vm1, %v299_v26, 0.0 }
 0x1ee   : > { %v312_v29 = vpack.c.bf16 %v295_v27, %v292_v24  ;;  %302 = vadd.xlane.f32.xlu0 %v301_v28  ;;  %v879_v30 = vpop.f32.mrb[3].mxu1  ;;  %v300_v31 = vsel %vm1273_vm3, %v295_v27, 0.0 }
 0x1ef   : > { %v304_v32 = vsel %vm174_vm1, %v300_v31, 0.0 }
 0x1f0   : > { %883 = vmatmul.mubr.msk.bf16.vlgmr.msra.gmra.mrb[4].mxu0 %vm174_vm1, %v312_v29  ;;  %305 = vadd.xlane.f32.xlu1 %v304_v32 }
 0x1f1   : > { %893 = vmatpush3.bf16.msra.mxu0 %v1251_v1  ;;  %894 = vmatprep.mubr.msk.bf16.mxu0 %vm1111_vm0, %v1110_v0 }
 0x1f2   : > { %904 = vmatprep.subr.bf16.mxu0 %v1110_v0 }
 0x2c3   : > { %v350_v33 = vpop.f32.mrb[4].mxu0 }
 0x2c4   : > { %v884_v34 = vpop.f32.mrb[5].mxu0  ;;  %v357_v35 = vsel %vm1265_vm2, %v350_v33, 0.0 }
 0x2c5   : > { %v353_v36 = vpop.f32.mrb[6].mxu0  ;;  %v359_v37 = vsel %vm174_vm1, %v357_v35, 0.0  ;;  %v177_v34 = vpop.xlane.xlu0 %176 }
 0x2c6   : > { %v370_v38 = vpack.c.bf16 %v353_v36, %v350_v33  ;;  %360 = vadd.xlane.f32.xlu0 %v359_v37  ;;  %v885_v39 = vpop.f32.mrb[7].mxu0  ;;  %v358_v40 = vsel %vm1273_vm3, %v353_v36, 0.0  ;;  %v245_v35 = vpop.xlane.xlu1 %244 }
 0x2c7   : > { %v362_v41 = vsel %vm174_vm1, %v358_v40, 0.0 }
 0x2c8   : > { %889 = vmatmul.mubr.msk.bf16.vlgmr.msra.gmra.mrb[4].mxu1 %vm174_vm1, %v370_v38  ;;  %363 = vadd.xlane.f32.xlu1 %v362_v41 }
 0x2c9   : > { %899 = vmatpush3.bf16.msra.mxu1 %v1251_v1  ;;  %900 = vmatprep.mubr.msk.bf16.mxu1 %vm1111_vm0, %v1110_v0  ;;  %v180_v36 = vpop.xlane.xlu0 %179 }
 0x2ca   : > { %910 = vmatprep.subr.bf16.mxu1 %v1110_v0  ;;  %v248_v37 = vpop.xlane.xlu1 %247 }
 0x2cd   : > { %v303_v38 = vpop.xlane.xlu0 %302 }
 0x2ce   : > { %v306_v39 = vpop.xlane.xlu1 %305 }
 0x353   : > { %v361_v7 = vpop.xlane.xlu0 %360 }
 0x355   : > { %v364_v40 = vpop.xlane.xlu1 %363 }
 0x39b   : > { %v408_v42 = vpop.f32.mrb[4].mxu1 }
 0x39c   : > { %v890_v43 = vpop.f32.mrb[5].mxu1  ;;  %v415_v44 = vsel %vm1265_vm2, %v408_v42, 0.0 }
 0x39d   : > { %v411_v45 = vpop.f32.mrb[6].mxu1  ;;  %v417_v46 = vsel %vm174_vm1, %v415_v44, 0.0  ;;  %v182_v43 = vsel %vm181_vm4, %v177_v34, 0.0  ;;  %v250_v44 = vsel %vm249_vm5, %v245_v35, 0.0 }
 0x39e   : > { %v428_v47 = vpack.c.bf16 %v411_v45, %v408_v42  ;;  %418 = vadd.xlane.f32.xlu0 %v417_v46  ;;  %v891_v48 = vpop.f32.mrb[7].mxu1  ;;  %v416_v49 = vsel %vm1273_vm3, %v411_v45, 0.0  ;;  %v183_v46 = vsel %vm181_vm4, %v180_v36, 0.0 }
 0x39f   : > { %v420_v50 = vsel %vm174_vm1, %v416_v49, 0.0  ;;  %v308_v48 = vsel %vm307_vm6, %v303_v38, 0.0  ;;  %v252_v49 = vadd.f32 %v250_v44, %v182_v43 }
 0x3a0   : > { %895 = vmatmul.mubr.msk.bf16.vlgmr.msra.gmra.mrb[8].mxu0 %vm174_vm1, %v428_v47  ;;  %421 = vadd.xlane.f32.xlu1 %v420_v50  ;;  %v251_v47 = vsel %vm249_vm5, %v248_v37, 0.0 }
 0x3a1   : > { %905 = vmatpush3.bf16.msra.mxu0 %v1251_v1  ;;  %906 = vmatprep.mubr.msk.bf16.mxu0 %vm1111_vm0, %v1110_v0 }
 0x3a2   : > { %916 = vmatprep.subr.bf16.mxu0 %v1110_v0 }
 0x42b   : > { %v419_v41 = vpop.xlane.xlu0 %418 }
 0x42d   : > { %v422_v12 = vpop.xlane.xlu1 %421 }
 0x473   : > { %v466_v51 = vpop.f32.mrb[8].mxu0 }
 0x474   : > { %v896_v52 = vpop.f32.mrb[9].mxu0  ;;  %v473_v53 = vsel %vm1265_vm2, %v466_v51, 0.0 }
 0x475   : > { %v469_v54 = vpop.f32.mrb[10].mxu0  ;;  %v475_v55 = vsel %vm174_vm1, %v473_v53, 0.0  ;;  %v366_v52 = vsel %vm365_vm7, %v361_v7, 0.0  ;;  %v253_v53 = vadd.f32 %v251_v47, %v183_v46 }
 0x476   : > { %v486_v56 = vpack.c.bf16 %v469_v54, %v466_v51  ;;  %476 = vadd.xlane.f32.xlu0 %v475_v55  ;;  %v897_v57 = vpop.f32.mrb[11].mxu0  ;;  %v474_v58 = vsel %vm1273_vm3, %v469_v54, 0.0  ;;  %v309_v51 = vsel %vm307_vm6, %v306_v39, 0.0  ;;  %v310_v54 = vadd.f32 %v308_v48, %v252_v49 }
 0x477   : > { %v478_v59 = vsel %vm174_vm1, %v474_v58, 0.0  ;;  %v424_v57 = vsel %vm423_vm8, %v419_v41, 0.0  ;;  %v311_v58 = vadd.f32 %v309_v51, %v253_v53 }
 0x478   : > { %901 = vmatmul.mubr.msk.bf16.vlgmr.msra.gmra.mrb[8].mxu1 %vm174_vm1, %v486_v56  ;;  %479 = vadd.xlane.f32.xlu1 %v478_v59  ;;  %v367_v56 = vsel %vm365_vm7, %v364_v40, 0.0  ;;  %v368_v59 = vadd.f32 %v366_v52, %v310_v54 }
 0x479   : > { %911 = vmatpush3.bf16.msra.mxu1 %v1251_v1  ;;  %912 = vmatprep.mubr.msk.bf16.mxu1 %vm1111_vm0, %v1110_v0 }
 0x503   : > { %v477_v42 = vpop.xlane.xlu0 %476 }
 0x505   : > { %v480_v45 = vpop.xlane.xlu1 %479 }
 0x54b   : > { %v524_v60 = vpop.f32.mrb[8].mxu1 }
 0x54c   : > { %v902_v61 = vpop.f32.mrb[9].mxu1  ;;  %v531_v62 = vsel %vm1265_vm2, %v524_v60, 0.0 }
 0x54d   : > { %v527_v63 = vpop.f32.mrb[10].mxu1  ;;  %v533_v2 = vsel %vm174_vm1, %v531_v62, 0.0  ;;  %v425_v61 = vsel %vm423_vm8, %v422_v12, 0.0  ;;  %v482_v62 = vsel %vm481_vm9, %v477_v42, 0.0 }
 0x54e   : > { %v544_v3 = vpack.c.bf16 %v527_v63, %v524_v60  ;;  %534 = vadd.xlane.f32.xlu0 %v533_v2  ;;  %v903_v4 = vpop.f32.mrb[11].mxu1  ;;  %v532_v6 = vsel %vm1273_vm3, %v527_v63, 0.0  ;;  %v369_v63 = vadd.f32 %v367_v56, %v311_v58  ;;  %v426_v2 = vadd.f32 %v424_v57, %v368_v59 }
 0x54f   : > { %v536_v8 = vsel %vm174_vm1, %v532_v6, 0.0  ;;  %v483_v4 = vsel %vm481_vm9, %v480_v45, 0.0 }
 0x550   : > { %907 = vmatmul.mubr.msk.bf16.vlgmr.msra.gmra.mrb[12].mxu0 %vm174_vm1, %v544_v3  ;;  %537 = vadd.xlane.f32.xlu1 %v536_v8  ;;  %v427_v8 = vadd.f32 %v425_v61, %v369_v63 }
 0x551   : > { %917 = vmatpush3.bf16.msra.mxu0 %v1251_v1  ;;  %918 = vmatprep.mubr.msk.bf16.mxu0 %vm1111_vm0, %v1110_v0 }
 0x5db   : > { %v535_v50 = vpop.xlane.xlu0 %534 }
 0x5dc   : > { %v540_v6 = vsel %vm539_vm10, %v535_v50, 0.0 }
 0x5dd   : > { %v538_v55 = vpop.xlane.xlu1 %537 }
 0x623   : > { %v582_v9 = vpop.f32.mrb[12].mxu0 }
 0x624   : > { %v908_v10 = vpop.f32.mrb[13].mxu0  ;;  %v589_v11 = vsel %vm1265_vm2, %v582_v9, 0.0 }
 0x625   : > { %v585_v13 = vpop.f32.mrb[14].mxu0  ;;  %v591_v14 = vsel %vm174_vm1, %v589_v11, 0.0  ;;  %v541_v11 = vsel %vm539_vm10, %v538_v55, 0.0 }
 0x626   : > { %v602_v15 = vpack.c.bf16 %v585_v13, %v582_v9  ;;  %592 = vadd.xlane.f32.xlu0 %v591_v14  ;;  %v909_v16 = vpop.f32.mrb[15].mxu0  ;;  %v590_v17 = vsel %vm1273_vm3, %v585_v13, 0.0  ;;  %v484_v9 = vadd.f32 %v482_v62, %v426_v2  ;;  %v485_v14 = vadd.f32 %v483_v4, %v427_v8 }
 0x627   : > { %v594_v18 = vsel %vm174_vm1, %v590_v17, 0.0 }
 0x628   : > { %913 = vmatmul.mubr.msk.bf16.vlgmr.msra.gmra.mrb[12].mxu1 %vm174_vm1, %v602_v15  ;;  %595 = vadd.xlane.f32.xlu1 %v594_v18  ;;  %v542_v15 = vadd.f32 %v540_v6, %v484_v9 }
 0x6b3   : > { %v593_v60 = vpop.xlane.xlu0 %592 }
 0x6b4   : > { %v598_v13 = vsel %vm597_vm11, %v593_v60, 0.0 }
 0x6b5   : > { %v596_v3 = vpop.xlane.xlu1 %595 }
 0x6b6   : > { %v599_v17 = vsel %vm597_vm11, %v596_v3, 0.0 }
 0x6fb   : > { %v640_v0 = vpop.f32.mrb[12].mxu1 }
 0x6fc   : > { %v914_v1 = vpop.f32.mrb[13].mxu1  ;;  %v647_v19 = vsel %vm1265_vm2, %v640_v0, 0.0 }
 0x6fd   : > { %v643_v20 = vpop.f32.mrb[14].mxu1  ;;  %v649_v21 = vsel %vm174_vm1, %v647_v19, 0.0  ;;  %v600_v1 = vadd.f32 %v598_v13, %v542_v15 }
 0x6fe   : > { %v660_v22 = vpack.c.bf16 %v643_v20, %v640_v0  ;;  %650 = vadd.xlane.f32.xlu0 %v649_v21  ;;  %v915_v23 = vpop.f32.mrb[15].mxu1  ;;  %v648_v24 = vsel %vm1273_vm3, %v643_v20, 0.0  ;;  %v543_v0 = vadd.f32 %v541_v11, %v485_v14 }
 0x6ff   : > { %v652_v25 = vsel %vm174_vm1, %v648_v24, 0.0 }
 0x700   : > { %919 = vmatmul.mubr.msk.bf16.vlgmr.msra.gmra.mrb[16].mxu0 %vm174_vm1, %v660_v22  ;;  %653 = vadd.xlane.f32.xlu1 %v652_v25  ;;  %v601_v20 = vadd.f32 %v599_v17, %v543_v0 }
 0x78b   : > { %v651_v10 = vpop.xlane.xlu0 %650 }
 0x78c   : > { %v656_v18 = vsel %vm655_vm12, %v651_v10, 0.0 }
 0x78d   : > { %v654_v16 = vpop.xlane.xlu1 %653  ;;  %v658_v21 = vadd.f32 %v656_v18, %v600_v1 }
 0x78e   : > { %v657_v19 = vsel %vm655_vm12, %v654_v16, 0.0 }
 0x78f   : > { %v659_v24 = vadd.f32 %v657_v19, %v601_v20 }
 0x7d3   : > { %v698_v26 = vpop.f32.mrb[16].mxu0 }
 0x7d4   : > { %v705_v27 = vsel %vm1265_vm2, %v698_v26, 0.0  ;;  %v920_v28 = vpop.f32.mrb[17].mxu0 }
 0x7d5   : > { %v701_v29 = vpop.f32.mrb[18].mxu0  ;;  %v707_v30 = vsel %vm174_vm1, %v705_v27, 0.0 }
 0x7d6   : > { %v706_v31 = vsel %vm1273_vm3, %v701_v29, 0.0  ;;  %708 = vadd.xlane.f32.xlu0 %v707_v30  ;;  %v921_v32 = vpop.f32.mrb[19].mxu0 }
 0x7d7   : > { %v710_v33 = vsel %vm174_vm1, %v706_v31, 0.0 }
 0x7d8   : > { %711 = vadd.xlane.f32.xlu1 %v710_v33 }
 0x863   : > { %v709_v22 = vpop.xlane.xlu0 %708 }
 0x864   : > { %v714_v23 = vsel %vm713_vm13, %v709_v22, 0.0 }
 0x865   : > { %v716_v25 = vadd.f32 %v714_v23, %v658_v21  ;;  %v712_v26 = vpop.xlane.xlu1 %711 }
 0x866   : > { %v715_v27 = vsel %vm713_vm13, %v712_v26, 0.0 }
 0x867   : > { %718 = vst.msk [vmem:[%s148_s29] sm:$0xff] %vm174_vm1, %v716_v25  ;;  %v717_v5 = vadd.f32 %v715_v27, %v659_v24 }
 0x869   : > { %719 = vst.msk [vmem:[%s148_s29 + $0x8] sm:$0xff] %vm174_vm1, %v717_v5 }
 0x86a   : > { %1036 = shalt.err (!%p1033_p5)
}
 0x86b   : > { %s1037_s22 = scalar_lea.hbm %s1379_s12, 256  ;;  %s1041_s25 = scalar_lea.hbm %s1433_s1, 512 }
 0x86c   : > { %p1038_p4 = scmp.ne.s32.totalorder %s1379_s12, %s1037_s22  ;;  %p1042_p12 = scmp.lt.u32.totalorder %s1379_s12, %s1433_s1 }
 0x86d   : > { %p1043_p1 = scmp.lt.u32.totalorder %s1041_s25, %s1037_s22  ;;  %p1045_p8 = scmp.lt.u32.totalorder %s1037_s22, %s1379_s12 }
 0x86e   : > { %p1039_p7 = pnand %p1038_p4, %p1445_p9 }
 0x86f   : > { %p1044_p3 = por %p1043_p1, %p1042_p12 }
 0x870   : > { %p1040_p10 = pneg %p1039_p7 }
 0x871   : > { %p1046_p11 = por %p1045_p8, %p1044_p3 }
 0x873   : > { %p1047_p0 = pnand %p1046_p11, %p1040_p10 }
 0x875   : > { %1050 = shalt.err (!%p1047_p0)
}
 0x876   : > { %s1113_s4 = smov 128   ;;  %s1114_s18 = smov 8  }
 0x877   : > { %924 = dma.vmem_to_hbm [thread:$0]  (%p1445_p9), %s1381_s30, 256, %s1379_s12, %s721_s9, %s1113_s4, %s1113_s4, %s1114_s18  }
 0x878 PF: > { %s751_s27 = sand.u32 1, %s1085_s6   ;;  %p1446_p6 = scmp.ne.s32.totalorder %s1438_s21, 0 }
 0x879   : > { %p1447_p13 = scmp.ge.s32.totalorder %s1105_s11, 2  ;;  %s752_s29 = scalar_lea.sflag [#allocation4], %s751_s27 }
 0x87b   : > { %p931_p2 = pnand %p1447_p13, %p1446_p6 }
 0x87d   : > { %1080 = dma.done.wait (!%p931_p2), %s752_s29, 256  }
 0x87e   : > { %1082 = vsyncadd (!%p931_p2), %s752_s29, 4294967040  ;;  %s17_s11 = sadd.s32 1, %s1105_s11   ;;  %s1448_s6 = smov %s1089_s7 }
 0x87f   : > { %p14_p5 = scmp.ge.s32.totalorder %s17_s11, 4   ;;  %s1449_s7 = smov %s1093_s8 }
 0x880   : > { %s1450_s8 = smov %s1181_s20  ;;  %s1451_s9 = smov %s1101_s10 }
 0x881   : > { %s1452_s10 = smov %s1454_s14  ;;  %16 = sbr.rel (!%p14_p5) target bundleno = 6 (0x6), region = 70 }
 0x888   :  { %757 = vsyncpa [#allocation3], 1 }
 0x889   :  { %759 = vsyncpa [#allocation3 + $0x1], 1 }
 0x88a   :  { %760 = vsyncpa [#allocation4], 1 }
 0x88b   :  { %762 = vsyncpa [#allocation4 + $0x1], 1 }

</bundles_post_ra>
